<compile_context>
chip_gen: v7x
topology: tpu7x:2x2x1
jax: 0.10.0
libtpu: 0.0.40
codegen_flags: <defaults>
</compile_context>

<pallas_src>
import functools

import jax
import jax.numpy as jnp
from jax.experimental import pallas as pl
from jax.experimental.pallas import tpu as pltpu


def se_kernel(x_ref, w1_ref, b1_ref, w2_ref, b2_ref, o_ref, *, inv_hw, nb):
    # x_ref block: (NB, C, HW_pad); weights/biases are full arrays.
    # Global average pool: f32 accumulation over the (zero-padded) lane axis,
    # scaled by the *true* 1/(H*W) so the padding does not skew the mean.
    pooled = jnp.sum(x_ref[...].astype(jnp.float32), axis=-1) * inv_hw  # (NB, C)

    # squeeze: w1 @ pooled^T -> (C_r, NB), + bias, ReLU   (contracted without
    # materializing a transpose)
    y1 = jax.lax.dot_general(
        w1_ref[...], pooled,
        dimension_numbers=(((1,), (1,)), ((), ())),
        preferred_element_type=jnp.float32) + b1_ref[...]
    y1 = jnp.maximum(y1, 0.0)                                           # (C_r, NB)

    # excite: w2 @ y1 -> (C, NB), + bias, Sigmoid
    y2 = jnp.dot(w2_ref[...], y1,
                 preferred_element_type=jnp.float32) + b2_ref[...]
    scale = jax.nn.sigmoid(y2)                                          # (C, NB)

    # Channel-wise rescale, one sample at a time (static unrolled loop; nb is
    # capped small in the wrapper). (C,1) broadcasts over (C, HW_pad) lanes.
    for n in range(nb):
        o_ref[n] = (x_ref[n] * scale[:, n:n + 1]).astype(o_ref.dtype)


def se_module_pallas(x, w1, b1, w2, b2):
    """x: (N, C, H, W); w1: (C_r, C); b1: (C_r,); w2: (C, C_r); b2: (C,)."""
    N, C, H, W = x.shape
    HW = H * W
    C_r = w1.shape[0]

    # Lane-dense spatial axis: pad HW up to a multiple of 128.
    HW_pad = ((HW + 127) // 128) * 128

    x2 = x.reshape(N, C, HW)
    if HW_pad != HW:
        x2 = jnp.pad(x2, ((0, 0), (0, 0), (0, HW_pad - HW)))

    # Pick NB samples per grid step:
    #  - keep double-buffered in+out blocks (4 * NB * C * HW_pad * itemsize)
    #    under a 16 MiB budget (fits v5e/v6e/v7x scoped VMEM with margin),
    #  - cap at 16 (unrolled rescale loop; blocks are already >=0.5-2 MiB),
    #  - cap at ceil(N/2) so v7x's two TensorCores both get grid steps.
    itemsize = jnp.dtype(x.dtype).itemsize
    bytes_per_sample = C * HW_pad * itemsize
    vmem_block_budget = 16 * 1024 * 1024
    nb = int(max(1, vmem_block_budget // (4 * bytes_per_sample)))
    nb = min(nb, 16, N)
    if N >= 2:
        nb = min(nb, (N + 1) // 2)
    nb = max(nb, 1)

    # Pad N so every grid step sees a full block (padded samples are zero and
    # produce harmless values that are sliced off below).
    n_steps = -(-N // nb)
    N_pad = n_steps * nb
    if N_pad != N:
        x2 = jnp.pad(x2, ((0, N_pad - N), (0, 0), (0, 0)))

    w1f = w1.astype(jnp.float32)                 # (C_r, C)
    w2f = w2.astype(jnp.float32)                 # (C, C_r)
    b1c = b1.reshape(C_r, 1).astype(jnp.float32)
    b2c = b2.reshape(C, 1).astype(jnp.float32)

    kernel = functools.partial(se_kernel, inv_hw=1.0 / HW, nb=nb)

    out = pl.pallas_call(
        kernel,
        out_shape=jax.ShapeDtypeStruct((N_pad, C, HW_pad), x.dtype),
        grid_spec=pltpu.PrefetchScalarGridSpec(
            num_scalar_prefetch=0,
            grid=(n_steps,),
            in_specs=[
                pl.BlockSpec((nb, C, HW_pad), lambda i: (i, 0, 0)),  # x batch block
                pl.BlockSpec((C_r, C), lambda i: (0, 0)),            # w1 (full)
                pl.BlockSpec((C_r, 1), lambda i: (0, 0)),            # b1 (full)
                pl.BlockSpec((C, C_r), lambda i: (0, 0)),            # w2 (full)
                pl.BlockSpec((C, 1), lambda i: (0, 0)),              # b2 (full)
            ],
            out_specs=pl.BlockSpec((nb, C, HW_pad), lambda i: (i, 0, 0)),
        ),
        compiler_params=pltpu.CompilerParams(
            dimension_semantics=("parallel",),
            vmem_limit_bytes=32 * 1024 * 1024,
        ),
    )(x2, w1f, b1c, w2f, b2c)

    out = out[:N, :, :HW]
    return out.reshape(N, C, H, W)


def se_module_ref(x, w1, b1, w2, b2):
    """Plain-JAX reference matching the PyTorch module."""
    pooled = jnp.mean(x, axis=(2, 3))                      # (N, C)
    y1 = jnp.maximum(pooled @ w1.T + b1, 0.0)              # (N, C_r)
    y2 = jax.nn.sigmoid(y1 @ w2.T + b2)                    # (N, C)
    return x * y2[:, :, None, None]


if __name__ == "__main__":
    # module config (defaults from the PyTorch module)
    n_feats = 64
    reduction = 16
    c_r = n_feats // reduction

    # small input consistent with the forward pass (batch 8 so multiple
    # samples land in each grid step and the grid still has >=2 steps)
    N, H, W = 8, 16, 16

    key = jax.random.PRNGKey(0)
    kx, k1, k2, k3, k4 = jax.random.split(key, 5)

    x = jax.random.normal(kx, (N, n_feats, H, W), dtype=jnp.float32)

    # deterministic synthetic parameters (Conv2d 1x1 weights squeezed to 2-D)
    w1 = jax.random.normal(k1, (c_r, n_feats), dtype=jnp.float32) * 0.1   # (C_r, C)
    b1 = jax.random.normal(k2, (c_r,), dtype=jnp.float32) * 0.1           # (C_r,)
    w2 = jax.random.normal(k3, (n_feats, c_r), dtype=jnp.float32) * 0.1   # (C, C_r)
    b2 = jax.random.normal(k4, (n_feats,), dtype=jnp.float32) * 0.1       # (C,)

    # f32 run + strict check against the reference
    out = se_module_pallas(x, w1, b1, w2, b2)
    out = jax.block_until_ready(out)
    ref = se_module_ref(x, w1, b1, w2, b2)
    assert out.shape == (N, n_feats, H, W)
    assert jnp.allclose(out, ref, atol=1e-4, rtol=1e-4)

    # bf16 activations (halves HBM traffic on this bandwidth-bound op)
    x_bf = x.astype(jnp.bfloat16)
    out_bf = se_module_pallas(x_bf, w1, b1, w2, b2)
    out_bf = jax.block_until_ready(out_bf)
    ref_bf = se_module_ref(x_bf.astype(jnp.float32), w1, b1, w2, b2)
    assert out_bf.dtype == jnp.bfloat16
    assert jnp.allclose(out_bf.astype(jnp.float32), ref_bf, atol=2e-2, rtol=2e-2)

    print("KERNEL_OK")
</pallas_src>

<mosaic_0001>
module attributes {stable_mosaic.version = 11 : i64} {
  func.func @se_kernel(%arg0: i32, %arg1: memref<4x64x256xf32, #tpu.memory_space<vmem>>, %arg2: memref<4x64xf32, #tpu.memory_space<vmem>>, %arg3: memref<4x1xf32, #tpu.memory_space<vmem>>, %arg4: memref<64x4xf32, #tpu.memory_space<vmem>>, %arg5: memref<64x1xf32, #tpu.memory_space<vmem>>, %arg6: memref<4x64x256xf32, #tpu.memory_space<vmem>>) attributes {dimension_semantics = [#tpu.dimension_semantics<parallel>], iteration_bounds = array<i64: 2>, scalar_prefetch = 0 : i64, scratch_operands = 0 : i64, tpu.core_type = #tpu.core_type<tc>, window_params = [{transform_indices = @transform_0, window_bounds = array<i64: 4, 64, 256>}, {pipeline_mode = #tpu.pipeline_mode<synchronous>, transform_indices = @transform_1, window_bounds = array<i64: 4, 64>}, {pipeline_mode = #tpu.pipeline_mode<synchronous>, transform_indices = @transform_2, window_bounds = array<i64: 4, 1>}, {pipeline_mode = #tpu.pipeline_mode<synchronous>, transform_indices = @transform_3, window_bounds = array<i64: 64, 4>}, {pipeline_mode = #tpu.pipeline_mode<synchronous>, transform_indices = @transform_4, window_bounds = array<i64: 64, 1>}, {transform_indices = @transform_5, window_bounds = array<i64: 4, 64, 256>}]} {
    %c0 = arith.constant 0 : index
    %c0_0 = arith.constant 0 : index
    %c0_1 = arith.constant 0 : index
    %0 = vector.load %arg1[%c0, %c0_0, %c0_1] : memref<4x64x256xf32, #tpu.memory_space<vmem>>, vector<4x64x256xf32>
    %cst = arith.constant dense<0.000000e+00> : vector<4x64xf32>
    %1 = vector.multi_reduction <add>, %0, %cst [2] : vector<4x64x256xf32> to vector<4x64xf32>
    %cst_2 = arith.constant 3.906250e-03 : f32
    %2 = vector.broadcast %cst_2 : f32 to vector<4x64xf32>
    %3 = arith.mulf %1, %2 : vector<4x64xf32>
    %c0_3 = arith.constant 0 : index
    %c0_4 = arith.constant 0 : index
    %4 = vector.load %arg2[%c0_3, %c0_4] : memref<4x64xf32, #tpu.memory_space<vmem>>, vector<4x64xf32>
    %cst_5 = arith.constant dense<0.000000e+00> : vector<4x4xf32>
    %5 = tpu.matmul %4, %3, %cst_5 {dimension_numbers = #tpu.dot_dimension_numbers<[1], [1], [0], [0], [0, 0, 1, 0], [], []>} : vector<4x64xf32>, vector<4x64xf32>, vector<4x4xf32> -> vector<4x4xf32>
    %c0_6 = arith.constant 0 : index
    %c0_7 = arith.constant 0 : index
    %6 = vector.load %arg3[%c0_6, %c0_7] : memref<4x1xf32, #tpu.memory_space<vmem>>, vector<4x1xf32>
    %7 = vector.broadcast %6 : vector<4x1xf32> to vector<4x4xf32>
    %8 = arith.addf %5, %7 : vector<4x4xf32>
    %cst_8 = arith.constant 0.000000e+00 : f32
    %9 = vector.broadcast %cst_8 : f32 to vector<4x4xf32>
    %10 = arith.maximumf %8, %9 : vector<4x4xf32>
    %c0_9 = arith.constant 0 : index
    %c0_10 = arith.constant 0 : index
    %11 = vector.load %arg4[%c0_9, %c0_10] : memref<64x4xf32, #tpu.memory_space<vmem>>, vector<64x4xf32>
    %cst_11 = arith.constant dense<0.000000e+00> : vector<64x4xf32>
    %12 = tpu.matmul %11, %10, %cst_11 {dimension_numbers = #tpu.dot_dimension_numbers<[1], [0], [0], [1], [0, 0, 1, 1], [], []>} : vector<64x4xf32>, vector<4x4xf32>, vector<64x4xf32> -> vector<64x4xf32>
    %c0_12 = arith.constant 0 : index
    %c0_13 = arith.constant 0 : index
    %13 = vector.load %arg5[%c0_12, %c0_13] : memref<64x1xf32, #tpu.memory_space<vmem>>, vector<64x1xf32>
    %14 = vector.broadcast %13 : vector<64x1xf32> to vector<64x4xf32>
    %15 = arith.addf %12, %14 : vector<64x4xf32>
    %16 = arith.negf %15 : vector<64x4xf32>
    %17 = math.exp %16 : vector<64x4xf32>
    %cst_14 = arith.constant 1.000000e+00 : f32
    %18 = vector.broadcast %cst_14 : f32 to vector<64x4xf32>
    %19 = arith.addf %18, %17 : vector<64x4xf32>
    %20 = arith.divf %18, %19 : vector<64x4xf32>
    %c0_15 = arith.constant 0 : index
    %c0_16 = arith.constant 0 : index
    %c0_17 = arith.constant 0 : index
    %21 = vector.load %arg1[%c0_15, %c0_16, %c0_17] : memref<4x64x256xf32, #tpu.memory_space<vmem>>, vector<1x64x256xf32>
    %22 = vector.shape_cast %21 : vector<1x64x256xf32> to vector<64x256xf32>
    %23 = vector.extract_strided_slice %20 {offsets = [0, 0], sizes = [64, 1], strides = [1, 1]} : vector<64x4xf32> to vector<64x1xf32>
    %24 = vector.broadcast %23 : vector<64x1xf32> to vector<64x256xf32>
    %25 = arith.mulf %22, %24 : vector<64x256xf32>
    %c0_18 = arith.constant 0 : index
    %c0_19 = arith.constant 0 : index
    %c0_20 = arith.constant 0 : index
    %26 = vector.load %arg6[%c0_18, %c0_19, %c0_20] : memref<4x64x256xf32, #tpu.memory_space<vmem>>, vector<1x64x256xf32>
    %27 = vector.shape_cast %26 : vector<1x64x256xf32> to vector<64x256xf32>
    %28 = vector.shape_cast %25 : vector<64x256xf32> to vector<1x64x256xf32>
    tpu.vector_store %arg6[%c0_18, %c0_19, %c0_20], %28 {strides = array<i32>} : memref<4x64x256xf32, #tpu.memory_space<vmem>>, vector<1x64x256xf32>,
    %c1 = arith.constant 1 : index
    %c0_21 = arith.constant 0 : index
    %c0_22 = arith.constant 0 : index
    %29 = vector.load %arg1[%c1, %c0_21, %c0_22] : memref<4x64x256xf32, #tpu.memory_space<vmem>>, vector<1x64x256xf32>
    %30 = vector.shape_cast %29 : vector<1x64x256xf32> to vector<64x256xf32>
    %31 = vector.extract_strided_slice %20 {offsets = [0, 1], sizes = [64, 1], strides = [1, 1]} : vector<64x4xf32> to vector<64x1xf32>
    %32 = vector.broadcast %31 : vector<64x1xf32> to vector<64x256xf32>
    %33 = arith.mulf %30, %32 : vector<64x256xf32>
    %c1_23 = arith.constant 1 : index
    %c0_24 = arith.constant 0 : index
    %c0_25 = arith.constant 0 : index
    %34 = vector.load %arg6[%c1_23, %c0_24, %c0_25] : memref<4x64x256xf32, #tpu.memory_space<vmem>>, vector<1x64x256xf32>
    %35 = vector.shape_cast %34 : vector<1x64x256xf32> to vector<64x256xf32>
    %36 = vector.shape_cast %33 : vector<64x256xf32> to vector<1x64x256xf32>
    tpu.vector_store %arg6[%c1_23, %c0_24, %c0_25], %36 {strides = array<i32>} : memref<4x64x256xf32, #tpu.memory_space<vmem>>, vector<1x64x256xf32>,
    %c2 = arith.constant 2 : index
    %c0_26 = arith.constant 0 : index
    %c0_27 = arith.constant 0 : index
    %37 = vector.load %arg1[%c2, %c0_26, %c0_27] : memref<4x64x256xf32, #tpu.memory_space<vmem>>, vector<1x64x256xf32>
    %38 = vector.shape_cast %37 : vector<1x64x256xf32> to vector<64x256xf32>
    %39 = vector.extract_strided_slice %20 {offsets = [0, 2], sizes = [64, 1], strides = [1, 1]} : vector<64x4xf32> to vector<64x1xf32>
    %40 = vector.broadcast %39 : vector<64x1xf32> to vector<64x256xf32>
    %41 = arith.mulf %38, %40 : vector<64x256xf32>
    %c2_28 = arith.constant 2 : index
    %c0_29 = arith.constant 0 : index
    %c0_30 = arith.constant 0 : index
    %42 = vector.load %arg6[%c2_28, %c0_29, %c0_30] : memref<4x64x256xf32, #tpu.memory_space<vmem>>, vector<1x64x256xf32>
    %43 = vector.shape_cast %42 : vector<1x64x256xf32> to vector<64x256xf32>
    %44 = vector.shape_cast %41 : vector<64x256xf32> to vector<1x64x256xf32>
    tpu.vector_store %arg6[%c2_28, %c0_29, %c0_30], %44 {strides = array<i32>} : memref<4x64x256xf32, #tpu.memory_space<vmem>>, vector<1x64x256xf32>,
    %c3 = arith.constant 3 : index
    %c0_31 = arith.constant 0 : index
    %c0_32 = arith.constant 0 : index
    %45 = vector.load %arg1[%c3, %c0_31, %c0_32] : memref<4x64x256xf32, #tpu.memory_space<vmem>>, vector<1x64x256xf32>
    %46 = vector.shape_cast %45 : vector<1x64x256xf32> to vector<64x256xf32>
    %47 = vector.extract_strided_slice %20 {offsets = [0, 3], sizes = [64, 1], strides = [1, 1]} : vector<64x4xf32> to vector<64x1xf32>
    %48 = vector.broadcast %47 : vector<64x1xf32> to vector<64x256xf32>
    %49 = arith.mulf %46, %48 : vector<64x256xf32>
    %c3_33 = arith.constant 3 : index
    %c0_34 = arith.constant 0 : index
    %c0_35 = arith.constant 0 : index
    %50 = vector.load %arg6[%c3_33, %c0_34, %c0_35] : memref<4x64x256xf32, #tpu.memory_space<vmem>>, vector<1x64x256xf32>
    %51 = vector.shape_cast %50 : vector<1x64x256xf32> to vector<64x256xf32>
    %52 = vector.shape_cast %49 : vector<64x256xf32> to vector<1x64x256xf32>
    tpu.vector_store %arg6[%c3_33, %c0_34, %c0_35], %52 {strides = array<i32>} : memref<4x64x256xf32, #tpu.memory_space<vmem>>, vector<1x64x256xf32>,
    return
  }
  func.func @transform_0(%arg0: i32) -> (i32, i32, i32) {
    %c0_i32 = arith.constant 0 : i32
    %c0_i32_0 = arith.constant 0 : i32
    %c0_i32_1 = arith.constant 0 : i32
    return %arg0, %c0_i32, %c0_i32_0 : i32, i32, i32
  }
  func.func @transform_1(%arg0: i32) -> (i32, i32) {
    %c0_i32 = arith.constant 0 : i32
    %c0_i32_0 = arith.constant 0 : i32
    %c0_i32_1 = arith.constant 0 : i32
    return %c0_i32, %c0_i32_0 : i32, i32
  }
  func.func @transform_2(%arg0: i32) -> (i32, i32) {
    %c0_i32 = arith.constant 0 : i32
    %c0_i32_0 = arith.constant 0 : i32
    %c0_i32_1 = arith.constant 0 : i32
    return %c0_i32, %c0_i32_0 : i32, i32
  }
  func.func @transform_3(%arg0: i32) -> (i32, i32) {
    %c0_i32 = arith.constant 0 : i32
    %c0_i32_0 = arith.constant 0 : i32
    %c0_i32_1 = arith.constant 0 : i32
    return %c0_i32, %c0_i32_0 : i32, i32
  }
  func.func @transform_4(%arg0: i32) -> (i32, i32) {
    %c0_i32 = arith.constant 0 : i32
    %c0_i32_0 = arith.constant 0 : i32
    %c0_i32_1 = arith.constant 0 : i32
    return %c0_i32, %c0_i32_0 : i32, i32
  }
  func.func @transform_5(%arg0: i32) -> (i32, i32, i32) {
    %c0_i32 = arith.constant 0 : i32
    %c0_i32_0 = arith.constant 0 : i32
    %c0_i32_1 = arith.constant 0 : i32
    return %arg0, %c0_i32, %c0_i32_0 : i32, i32, i32
  }
}

</mosaic_0001>

<bundles_post_ra>
// kernel: tpu_custom_call.1
= control target key start
LH: loop header
LB: loop body
LE: loop exit
PB: predicated region body
PF: predicated region fallthrough
CT: control target
= control target key end

     0   :  { %10 = vsyncpa [#allocation3], 0  ;;  %s2464_s0 = inlined_call_operand.hbm [shape: f32[8,64,256], index: 0, kind: input, shape index: {}]   ;;  %s2465_s1 = inlined_call_operand.vmem [shape: f32[4,64], index: 1, kind: input, shape index: {}]   ;;  %s2466_s2 = inlined_call_operand.vmem [shape: f32[4,1], index: 2, kind: input, shape index: {}]   ;;  %s2467_s3 = inlined_call_operand.vmem [shape: f32[64,4], index: 3, kind: input, shape index: {}]   ;;  %s2468_s4 = inlined_call_operand.vmem [shape: f32[64,1], index: 4, kind: input, shape index: {}]   ;;  %s2469_s5 = inlined_call_operand.hbm [shape: f32[8,64,256], index: 5, kind: output, shape index: {}]  }
   0x1   :  { %12 = vsyncpa [#allocation3 + $0x1], 0 }
   0x2   :  { %13 = vsyncpa [#allocation4], 0 }
   0x3   :  { %15 = vsyncpa [#allocation4 + $0x1], 0  ;;  %s1817_s18 = smov 0   ;;  %s1819_s19 = smov 0  }
   0x4   :  { %s1821_s20 = smov 0   ;;  %s1823_s21 = smov 0  }
   0x5 LB: > { %s1838_s22 = sadd.s32 4294967295, %s1773_s21   ;;  %s1392_s23 = sadd.s32 4294967294, %s1773_s21   ;;  %s1773_s21 = sphi %s1823_s21, %s2530_s21   ;;  %s1769_s20 = sphi %s1821_s20, %s2529_s20   ;;  %s1765_s19 = sphi %s1819_s19, %s2528_s19   ;;  %s1761_s18 = sphi %s1817_s18, %s2527_s18  }
   0x6   : > { %s1842_s24 = sadd.s32 1, %s1773_s21   ;;  %s28_s25 = sadd.s32 1, %s1769_s20 }
   0x7   : > { %s25_s26 = ssub.s32 %s1773_s21, %s1842_s24  ;;  %p35_p0 = scmp.ne.s32.totalorder %s1769_s20, %s1765_s19 }
   0x8   : > { %p26_p1 = scmp.eq.s32.totalorder %s25_s26, 0  ;;  %p36_p2 = scmp.eq.s32.totalorder %s1773_s21, 0 }
   0x9   : > { %p41_p3 = scmp.ne.s32.totalorder %s1765_s19, %s1761_s18  ;;  %p42_p4 = scmp.eq.s32.totalorder %s1838_s22, 0 }
   0xa   : > { %s1854_s27 = scalar_select %p26_p1, %s1769_s20, %s28_s25  }
   0xb   : > { %p1856_p5 = por %p36_p2, %p35_p0  ;;  %p1860_p6 = por %p42_p4, %p41_p3 }
   0xc   : > { %p149_p7 = scmp.eq.s32.totalorder %s1838_s22, 1  ;;  %p155_p8 = scmp.eq.s32.totalorder %s1392_s23, 1 }
   0xd   : > { %p1571_p10 = scmp.lt.s32.totalorder %s1773_s21, 2  ;;  %s187_s7 = sand.u32 1, %s1769_s20  }
   0xe   : > { %p1867_p11 = por %p149_p7, %p35_p0  ;;  %p1871_p12 = por %p155_p8, %p41_p3 }
   0xf   : > { %s1524_s8 = sshll.u32 %s1773_s21, 13  ;;  %s1395_s9 = sshll.u32 %s187_s7, 9 }
  0x10   : > { %s2490_s30 = scalar_select %p1867_p11, 1, 0 }
  0x11   : > { %s2491_s6 = scalar_select %p1871_p12, 1, 0 }
  0x12   : > { %s1880_s12 = scalar_lea.hbm %s2464_s0, %s1524_s8  ;;  %s191_s13 = scalar_lea.vmem [#allocation2], %s1395_s9 }
  0x13   : > { %s199_s14 = sshll.u32 %s191_s13, 4  ;;  %p1884_p13 = pnand %p1571_p10, %p1856_p5  ;;  %s1888_s14 = int_to_ptr.vmem [resolvable:$true] %s199_s14 }
  0x14   : > { %s1890_s16 = scalar_lea.sflag [#allocation3], %s187_s7  ;;  %s1677_s17 = scalar_lea.hbm %s1880_s12, 8192 }
  0x15   : > { %p1678_p0 = scmp.ne.s32.totalorder %s1880_s12, %s1677_s17  ;;  %p1679_p1 = pneg %p1884_p13 }
  0x16   : > { %s1682_s26 = scalar_lea.hbm %s2464_s0, 16384  ;;  %p1683_p4 = scmp.lt.u32.totalorder %s1880_s12, %s2464_s0 }
  0x17   : > { %p1680_p2 = pnand %p1679_p1, %p1678_p0  ;;  %p1684_p5 = scmp.lt.u32.totalorder %s1682_s26, %s1677_s17 }
  0x18   : > { %p1686_p8 = scmp.lt.u32.totalorder %s1677_s17, %s1880_s12 }
  0x19   : > { %p1681_p3 = pneg %p1680_p2  ;;  %p1685_p7 = por %p1684_p5, %p1683_p4 }
  0x1b   : > { %p1687_p10 = por %p1686_p8, %p1685_p7 }
  0x1d   : > { %p1688_p9 = pnand %p1687_p10, %p1681_p3 }
  0x1f   : > { %1691 = shalt.err (!%p1688_p9)
}
  0x20   : > { %s1692_s7 = scalar_lea.vmem %s1888_s14, 8192  ;;  %s1775_s9 = smov [#allocation2]  }
  0x21   : > { %p1693_p0 = scmp.ne.s32.totalorder %s1888_s14, %s1692_s7  ;;  %s1697_s10 = sshll.u32 %s1775_s9, 4  ;;  %s1698_s10 = int_to_ptr.vmem [resolvable:$false] %s1697_s10 }
  0x22   : > { %s1699_s11 = scalar_lea.vmem %s1698_s10, 16384  ;;  %p1700_p11 = scmp.lt.s32.totalorder %s1888_s14, %s1698_s10 }
  0x23   : > { %p1695_p2 = pnand %p1693_p0, %p1679_p1  ;;  %p1701_p4 = scmp.lt.s32.totalorder %s1699_s11, %s1692_s7 }
  0x25   : > { %p1696_p12 = pneg %p1695_p2  ;;  %p1702_p5 = por %p1701_p4, %p1700_p11 }
  0x27   : > { %p1703_p7 = pnand %p1702_p5, %p1696_p12 }
  0x29   : > { %1706 = shalt.err (!%p1703_p7)
}
  0x2a   : > { %s1776_s13 = smov 256   ;;  %s1777_s17 = smov 16  }
  0x2b   : > { %1566 = dma.hbm_to_vmem [thread:$0]  (!%p1884_p13), %s1880_s12, 8192, %s1888_s14, %s1890_s16, %s1776_s13, %s1776_s13, %s1777_s17  }
  0x2c   : > { %p1399_p9 = scmp.ge.s32.totalorder %s1773_s21, 1  ;;  %p207_p1 = scmp.lt.s32.totalorder %s1773_s21, 3 }
  0x2e   : > { %p208_p3 = pnand %p1399_p9, %p207_p1 }
  0x30   : > { %211 = sbr.rel (%p208_p3) target bundleno = 956 (0x3bc), region = 40 }
  0x37   : > { %s1921_s23 = sand.u32 1, %s1765_s19  }
  0x38   : > { %s1400_s25 = sshll.u32 %s1921_s23, 9  ;;  %s214_s26 = scalar_lea.sflag [#allocation3], %s1921_s23 }
  0x39   : > { %s1927_s28 = scalar_lea.vmem [#allocation2], %s1400_s25 }
  0x3a   : > { %1752 = dma.done.wait (%p1860_p6), %s214_s26, 8192  }
  0x3b   : > { %1754 = vsyncadd (%p1860_p6), %s214_s26, 4294959104  ;;  %v262_v0 = vld [vmem:[%s1927_s28 + $0x80] sm:$0xff]  ;;  %v263_v1 = vld [vmem:[%s1927_s28 + $0x88] sm:$0xff]  ;;  %vm1779_vm0 = vmmov 0   ;;  %vm488_vm1 = vcmask 130112   ;;  %vm495_vm2 = vcmask 195712  }
  0x3c   : > { %v1936_v2 = vld [vmem:[%s1927_s28] sm:$0xff]  ;;  %v334_v3 = vadd.f32 %v263_v1, %v262_v0  ;;  %v1939_v4 = vld [vmem:[%s1927_s28 + $0x8] sm:$0xff]  ;;  %v1942_v5 = vld [vmem:[%s1927_s28 + $0x90] sm:$0xff]  ;;  %vm502_vm3 = vcmask 261312   ;;  %vm509_vm4 = vcmask 326912   ;;  %vm516_vm5 = vcmask 392512  }
  0x3d   : > { %v1945_v6 = vld [vmem:[%s1927_s28 + $0x98] sm:$0xff]  ;;  %v310_v7 = vadd.f32 %v1939_v4, %v1936_v2  ;;  %v1950_v8 = vld [vmem:[%s1927_s28 + $0x10] sm:$0xff]  ;;  %v266_v12 = vld [vmem:[%s1927_s28 + $0xa0] sm:$0xff]  ;;  %vm523_vm6 = vcmask 458112   ;;  %vm530_vm7 = vcmask 523712   ;;  %vm649_vm8 = vcmask 1041409  }
  0x3e   : > { %v1953_v9 = vld [vmem:[%s1927_s28 + $0x18] sm:$0xff]  ;;  %335 = vadd.xlane.f32.xlu1 %v334_v3  ;;  %v337_v10 = vadd.f32 %v1945_v6, %v1942_v5  ;;  %v267_v13 = vld [vmem:[%s1927_s28 + $0xa8] sm:$0xff]  ;;  %v1962_v14 = vld [vmem:[%s1927_s28 + $0x20] sm:$0xff]  ;;  %vm651_vm9 = vcmask 1042434   ;;  %vm653_vm10 = vcmask 1043459   ;;  %vm655_vm11 = vcmask 523264  }
  0x3f   : > { %311 = vadd.xlane.f32.xlu0 %v310_v7  ;;  %v313_v11 = vadd.f32 %v1953_v9, %v1950_v8  ;;  %2493 = vst [vmem:[#allocation8_spill] sm:$0xff] %v1962_v14  ;;  %v1965_v15 = vld [vmem:[%s1927_s28 + $0x28] sm:$0xff]  ;;  %v340_v16 = vadd.f32 %v267_v13, %v266_v12  ;;  %v1970_v18 = vld [vmem:[%s1927_s28 + $0x110] sm:$0xff]  ;;  %v1973_v19 = vld [vmem:[%s1927_s28 + $0x118] sm:$0xff]  ;;  %vm788_vm12 = vcmask 31744   ;;  %vm813_vm13 = vcmask 1043456  }
  0x40   : > { %2494 = vst [vmem:[#allocation9_spill] sm:$0xff] %v1965_v15  ;;  %v316_v17 = vadd.f32 %v1965_v15, %v1962_v14  ;;  %v278_v20 = vld [vmem:[%s1927_s28 + $0x100] sm:$0xff]  ;;  %v279_v21 = vld [vmem:[%s1927_s28 + $0x108] sm:$0xff]  ;;  %v361_v22 = vadd.f32 %v1973_v19, %v1970_v18  ;;  %v1980_v24 = vld [vmem:[%s1927_s28 + $0xb0] sm:$0xff]  ;;  %s2287_s13 = scalar_lea.vmem [#allocation5], %s1400_s25  ;;  %s1526_s25 = sshll.u32 %s1838_s22, 13 }
  0x41   : > { %v358_v23 = vadd.f32 %v279_v21, %v278_v20  ;;  %v1983_v25 = vld [vmem:[%s1927_s28 + $0xb8] sm:$0xff]  ;;  %v1986_v26 = vld [vmem:[%s1927_s28 + $0x30] sm:$0xff]  ;;  %v1996_v30 = vld [vmem:[%s1927_s28 + $0x180] sm:$0xff]  ;;  %s1319_s17 = sshll.u32 %s2287_s13, 4  ;;  %s2416_s12 = scalar_lea.hbm %s2469_s5, %s1526_s25  ;;  %s2418_s17 = int_to_ptr.vmem [resolvable:$true] %s1319_s17 }
  0x42   : > { %338 = vadd.xlane.f32.xlu1 %v337_v10  ;;  %v1989_v27 = vld [vmem:[%s1927_s28 + $0x38] sm:$0xff]  ;;  %v343_v28 = vadd.f32 %v1983_v25, %v1980_v24  ;;  %2495 = vst [vmem:[#allocation10_spill] sm:$0xff] %v1996_v30  ;;  %v1999_v31 = vld [vmem:[%s1927_s28 + $0x188] sm:$0xff]  ;;  %v282_v32 = vld [vmem:[%s1927_s28 + $0x120] sm:$0xff]  ;;  %s1305_s22 = scalar_lea.sflag [#allocation4], %s1921_s23  ;;  %s1707_s14 = scalar_lea.vmem %s2418_s17, 8192 }
  0x43   : > { %314 = vadd.xlane.f32.xlu0 %v313_v11  ;;  %v319_v29 = vadd.f32 %v1989_v27, %v1986_v26  ;;  %2496 = vst [vmem:[#allocation11_spill] sm:$0xff] %v1999_v31  ;;  %v283_v33 = vld [vmem:[%s1927_s28 + $0x128] sm:$0xff]  ;;  %v382_v34 = vadd.f32 %v1999_v31, %v1996_v30  ;;  %v254_v36 = vld [vmem:[%s1927_s28 + $0x40] sm:$0xff]  ;;  %v2008_v38 = vld [vmem:[%s1927_s28 + $0x190] sm:$0xff]  ;;  %p1708_p6 = scmp.ne.s32.totalorder %s2418_s17, %s1707_s14  ;;  %p2524_p11 = scmp.ne.s32.totalorder %s2490_s30, 0 }
  0x44   : > { %v364_v35 = vadd.f32 %v283_v33, %v282_v32  ;;  %v255_v37 = vld [vmem:[%s1927_s28 + $0x48] sm:$0xff]  ;;  %v2011_v39 = vld [vmem:[%s1927_s28 + $0x198] sm:$0xff]  ;;  %v2016_v42 = vld [vmem:[%s1927_s28 + $0x130] sm:$0xff] }
  0x45   : > { %2497 = vst [vmem:[#allocation12_spill] sm:$0xff] %v2011_v39  ;;  %v322_v40 = vadd.f32 %v255_v37, %v254_v36  ;;  %v385_v41 = vadd.f32 %v2011_v39, %v2008_v38  ;;  %v2019_v43 = vld [vmem:[%s1927_s28 + $0x138] sm:$0xff]  ;;  %v270_v44 = vld [vmem:[%s1927_s28 + $0xc0] sm:$0xff]  ;;  %v271_v45 = vld [vmem:[%s1927_s28 + $0xc8] sm:$0xff]  ;;  %p1709_p12 = pnand %p1708_p6, %p2524_p11 }
  0x46   : > { %341 = vadd.xlane.f32.xlu1 %v340_v16  ;;  %v367_v46 = vadd.f32 %v2019_v43, %v2016_v42  ;;  %v346_v47 = vadd.f32 %v271_v45, %v270_v44  ;;  %v256_v48 = vld [vmem:[%s1927_s28 + $0x50] sm:$0xff]  ;;  %v257_v49 = vld [vmem:[%s1927_s28 + $0x58] sm:$0xff]  ;;  %v2028_v50 = vld [vmem:[%s1927_s28 + $0x1a0] sm:$0xff] }
  0x47   : > { %317 = vadd.xlane.f32.xlu0 %v316_v17  ;;  %2498 = vst [vmem:[#allocation13_spill] sm:$0xff] %v2028_v50  ;;  %v2031_v51 = vld [vmem:[%s1927_s28 + $0x1a8] sm:$0xff]  ;;  %v325_v52 = vadd.f32 %v257_v49, %v256_v48  ;;  %v286_v54 = vld [vmem:[%s1927_s28 + $0x140] sm:$0xff]  ;;  %v2038_v56 = vld [vmem:[%s1927_s28 + $0xd0] sm:$0xff]  ;;  %p1710_p13 = pneg %p1709_p12 }
  0x48   : > { %2499 = vst [vmem:[#allocation14_spill] sm:$0xff] %v2031_v51  ;;  %v388_v53 = vadd.f32 %v2031_v51, %v2028_v50  ;;  %v287_v55 = vld [vmem:[%s1927_s28 + $0x148] sm:$0xff]  ;;  %2500 = vst [vmem:[#allocation15_spill] sm:$0xff] %v2038_v56  ;;  %v2041_v57 = vld [vmem:[%s1927_s28 + $0xd8] sm:$0xff] }
  0x49   : > { %2501 = vst [vmem:[#allocation16_spill] sm:$0xff] %v2041_v57  ;;  %v370_v58 = vadd.f32 %v287_v55, %v286_v54  ;;  %v349_v59 = vadd.f32 %v2041_v57, %v2038_v56  ;;  %v258_v60 = vld [vmem:[%s1927_s28 + $0x60] sm:$0xff]  ;;  %v259_v61 = vld [vmem:[%s1927_s28 + $0x68] sm:$0xff]  ;;  %v2048_v62 = vld [vmem:[%s1927_s28 + $0x1b0] sm:$0xff]  ;;  %v1778_v54 = vmov 0.0  }
  0x4a   : > { %362 = vadd.xlane.f32.xlu1 %v361_v22  ;;  %v2051_v63 = vld [vmem:[%s1927_s28 + $0x1b8] sm:$0xff]  ;;  %v328_v0 = vadd.f32 %v259_v61, %v258_v60  ;;  %v2056_v3 = vld [vmem:[%s1927_s28 + $0x150] sm:$0xff]  ;;  %v274_v10 = vld [vmem:[%s1927_s28 + $0xe0] sm:$0xff]  ;;  %1538 = vmatprep.subr.mxu0 %v1778_v54 }
  0x4b   : > { %359 = vadd.xlane.f32.xlu0 %v358_v23  ;;  %v391_v1 = vadd.f32 %v2051_v63, %v2048_v62  ;;  %2502 = vst [vmem:[#allocation17_spill] sm:$0xff] %v2056_v3  ;;  %v2059_v7 = vld [vmem:[%s1927_s28 + $0x158] sm:$0xff]  ;;  %v275_v11 = vld [vmem:[%s1927_s28 + $0xe8] sm:$0xff]  ;;  %v260_v16 = vld [vmem:[%s1927_s28 + $0x70] sm:$0xff]  ;;  %1540 = vmatprep.mubr.msk.f32.mxu0 %vm1779_vm0, %v1778_v54 }
  0x4c   : > { %2503 = vst [vmem:[#allocation18_spill] sm:$0xff] %v2059_v7  ;;  %v373_v12 = vadd.f32 %v2059_v7, %v2056_v3  ;;  %v352_v13 = vadd.f32 %v275_v11, %v274_v10  ;;  %v261_v17 = vld [vmem:[%s1927_s28 + $0x78] sm:$0xff]  ;;  %v302_v20 = vld [vmem:[%s1927_s28 + $0x1c0] sm:$0xff]  ;;  %v303_v21 = vld [vmem:[%s1927_s28 + $0x1c8] sm:$0xff] }
  0x4d   : > { %v331_v22 = vadd.f32 %v261_v17, %v260_v16  ;;  %v394_v23 = vadd.f32 %v303_v21, %v302_v20  ;;  %v2072_v32 = vld [vmem:[%s1927_s28 + $0xf0] sm:$0xff]  ;;  %v2075_v33 = vld [vmem:[%s1927_s28 + $0xf8] sm:$0xff]  ;;  %v306_v48 = vld [vmem:[%s1927_s28 + $0x1e0] sm:$0xff] }
  0x4e   : > { %344 = vadd.xlane.f32.xlu1 %v343_v28  ;;  %v290_v28 = vld [vmem:[%s1927_s28 + $0x160] sm:$0xff]  ;;  %2504 = vst [vmem:[#allocation19_spill] sm:$0xff] %v2072_v32  ;;  %2505 = vst [vmem:[#allocation20_spill] sm:$0xff] %v2075_v33  ;;  %v292_v36 = vld [vmem:[%s1927_s28 + $0x170] sm:$0xff] }
  0x4f   : > { %320 = vadd.xlane.f32.xlu0 %v319_v29  ;;  %v291_v29 = vld [vmem:[%s1927_s28 + $0x168] sm:$0xff]  ;;  %v293_v37 = vld [vmem:[%s1927_s28 + $0x178] sm:$0xff]  ;;  %v439_v55 = vld [vmem:[%s2466_s2] sm:$0xf] }
  0x50   : > { %v379_v44 = vadd.f32 %v293_v37, %v292_v36  ;;  %v307_v49 = vld [vmem:[%s1927_s28 + $0x1e8] sm:$0xff] }
  0x52   : > { %383 = vadd.xlane.f32.xlu1 %v382_v34  ;;  %v376_v34 = vadd.f32 %v291_v29, %v290_v28  ;;  %v477_v28 = vlaneseq }
  0x53   : > { %365 = vadd.xlane.f32.xlu0 %v364_v35  ;;  %v355_v35 = vadd.f32 %v2075_v33, %v2072_v32 }
  0x54   : > { %v480_v37 = vshrl.u32 %v477_v28, 7 }
  0x56   : > { %323 = vadd.xlane.f32.xlu1 %v322_v40  ;;  %v2082_v40 = vld [vmem:[%s1927_s28 + $0x1d0] sm:$0xff] }
  0x57   : > { %386 = vadd.xlane.f32.xlu0 %v385_v41  ;;  %2506 = vst [vmem:[#allocation21_spill] sm:$0xff] %v2082_v40  ;;  %v2085_v41 = vld [vmem:[%s1927_s28 + $0x1d8] sm:$0xff] }
  0x58   : > { %2507 = vst [vmem:[#allocation22_spill] sm:$0xff] %v2085_v41  ;;  %v397_v45 = vadd.f32 %v2085_v41, %v2082_v40 }
  0x5a   : > { %368 = vadd.xlane.f32.xlu1 %v367_v46  ;;  %v308_v46 = vld [vmem:[%s1927_s28 + $0x1f0] sm:$0xff] }
  0x5b   : > { %347 = vadd.xlane.f32.xlu0 %v346_v47  ;;  %v309_v47 = vld [vmem:[%s1927_s28 + $0x1f8] sm:$0xff] }
  0x5e   : > { %326 = vadd.xlane.f32.xlu1 %v325_v52  ;;  %v403_v52 = vadd.f32 %v309_v47, %v308_v46 }
  0x5f   : > { %389 = vadd.xlane.f32.xlu0 %v388_v53  ;;  %v400_v53 = vadd.f32 %v307_v49, %v306_v48 }
  0x62   : > { %371 = vadd.xlane.f32.xlu1 %v370_v58  ;;  %v2471_v58 = vmov 0  }
  0x63   : > { %350 = vadd.xlane.f32.xlu0 %v349_v59  ;;  %1616 = vset.pattern.permute.xlu1 %v2471_v58 }
  0x64   : > { %1615 = vset.pattern.permute.xlu0 %v2471_v58 }
  0x66   : > { %329 = vadd.xlane.f32.xlu1 %v328_v0 }
  0x67   : > { %392 = vadd.xlane.f32.xlu0 %v391_v1 }
  0x6a   : > { %374 = vadd.xlane.f32.xlu1 %v373_v12 }
  0x6b   : > { %353 = vadd.xlane.f32.xlu0 %v352_v13 }
  0x6e   : > { %332 = vadd.xlane.f32.xlu1 %v331_v22 }
  0x6f   : > { %395 = vadd.xlane.f32.xlu0 %v394_v23 }
  0x72   : > { %377 = vadd.xlane.f32.xlu1 %v376_v34 }
  0x73   : > { %356 = vadd.xlane.f32.xlu0 %v355_v35  ;;  %v478_v35 = vand.u32 127, %v477_v28 }
  0x75   : > { %v497_v47 = vadd.s32 4294967272, %v478_v35  ;;  %v504_v48 = vadd.s32 4294967264, %v478_v35  ;;  %v518_v58 = vadd.s32 4294967248, %v478_v35 }
  0x76   : > { %380 = vadd.xlane.f32.xlu1 %v379_v44  ;;  %v483_v44 = vadd.s32 4294967288, %v478_v35 }
  0x77   : > { %398 = vadd.xlane.f32.xlu0 %v397_v45  ;;  %v490_v45 = vadd.s32 4294967280, %v478_v35  ;;  %v2114_v32 = vsub.s32 %v497_v47, %v480_v37  ;;  %v2116_v7 = vsub.s32 %v504_v48, %v480_v37 }
  0x79   : > { %v2110_v54 = vsub.s32 %v490_v45, %v480_v37 }
  0x7a   : > { %404 = vadd.xlane.f32.xlu1 %v403_v52  ;;  %v2106_v52 = vsub.s32 %v478_v35, %v480_v37 }
  0x7b   : > { %401 = vadd.xlane.f32.xlu0 %v400_v53  ;;  %v2108_v53 = vsub.s32 %v483_v44, %v480_v37 }
  0x91   : > { %442 = vperm.xlu0 %1615, %v439_v55   ;;  %v511_v55 = vadd.s32 4294967256, %v478_v35 }
  0x93   : > { %v2120_v30 = vsub.s32 %v511_v55, %v480_v37 }
  0xcb   : > { %v336_v59 = vpop.xlane.xlu1 %335 }
  0xcc   : > { %v312_v60 = vpop.xlane.xlu0 %311  ;;  %v414_v41 = vmul.f32 0.00390625, %v336_v59  ;;  %v525_v59 = vadd.s32 4294967240, %v478_v35 }
  0xcd   : > { %v406_v56 = vmul.f32 0.00390625, %v312_v60 }
  0xcf   : > { %v339_v61 = vpop.xlane.xlu1 %338 }
  0xd0   : > { %v315_v0 = vpop.xlane.xlu0 %314  ;;  %v415_v28 = vmul.f32 0.00390625, %v339_v61  ;;  %v2122_v61 = vsub.s32 %v518_v58, %v480_v37 }
  0xd1   : > { %v407_v40 = vmul.f32 0.00390625, %v315_v0  ;;  %v535_v0 = vrot.slane %v414_v41, %v2106_v52 }
  0xd2   : > { %v539_v48 = vrot.slane %v415_v28, %v2108_v53 }
  0xd3   : > { %v342_v1 = vpop.xlane.xlu1 %341 }
  0xd4   : > { %v318_v10 = vpop.xlane.xlu0 %317  ;;  %v416_v44 = vmul.f32 0.00390625, %v342_v1  ;;  %v487_v1 = vrot.slane %v407_v40, %v2108_v53  ;;  %v540_v40 = vsel %vm488_vm1, %v539_v48, %v535_v0 }
  0xd5   : > { %v408_v51 = vmul.f32 0.00390625, %v318_v10 }
  0xd6   : > { %v544_v10 = vrot.slane %v416_v44, %v2110_v54  ;;  %v2140_v44 = vsub.s32 %v525_v59, %v480_v37 }
  0xd7   : > { %v363_v11 = vpop.xlane.xlu1 %362  ;;  %v494_v60 = vrot.slane %v408_v51, %v2110_v54 }
  0xd8   : > { %v360_v12 = vpop.xlane.xlu0 %359  ;;  %v423_v45 = vmul.f32 0.00390625, %v363_v11 }
  0xd9   : > { %v422_v50 = vmul.f32 0.00390625, %v360_v12 }
  0xda   : > { %v578_v12 = vrot.slane %v423_v45, %v2108_v53 }
  0xdb   : > { %v345_v13 = vpop.xlane.xlu1 %344  ;;  %v574_v58 = vrot.slane %v422_v50, %v2106_v52 }
  0xdc   : > { %v321_v16 = vpop.xlane.xlu0 %320  ;;  %v417_v57 = vmul.f32 0.00390625, %v345_v13 }
  0xdd   : > { %v409_v31 = vmul.f32 0.00390625, %v321_v16  ;;  %v482_v16 = vrot.slane %v406_v56, %v2106_v52 }
  0xde   : > { %v549_v13 = vrot.slane %v417_v57, %v2114_v32  ;;  %v545_v57 = vsel %vm495_vm2, %v544_v10, %v540_v40 }
  0xdf   : > { %v384_v17 = vpop.xlane.xlu1 %383  ;;  %v489_v50 = vsel %vm488_vm1, %v487_v1, %v482_v16 }
  0xe0   : > { %v366_v20 = vpop.xlane.xlu0 %365 }
  0xe1   : > { %v424_v15 = vmul.f32 0.00390625, %v366_v20  ;;  %v501_v20 = vrot.slane %v409_v31, %v2114_v32  ;;  %v496_v31 = vsel %vm495_vm2, %v494_v60, %v489_v50 }
  0xe3   : > { %v324_v21 = vpop.xlane.xlu1 %323 }
  0xe4   : > { %v387_v22 = vpop.xlane.xlu0 %386  ;;  %v410_v14 = vmul.f32 0.00390625, %v324_v21  ;;  %v430_v21 = vmul.f32 0.00390625, %v384_v17  ;;  %v579_v17 = vsel %vm488_vm1, %v578_v12, %v574_v58 }
  0xe5   : > { %v431_v11 = vmul.f32 0.00390625, %v387_v22  ;;  %v583_v22 = vrot.slane %v424_v15, %v2110_v54 }
  0xe6   : > { %v508_v51 = vrot.slane %v410_v14, %v2116_v7  ;;  %v503_v14 = vsel %vm502_vm3, %v501_v20, %v496_v31 }
  0xe7   : > { %v369_v23 = vpop.xlane.xlu1 %368  ;;  %v617_v56 = vrot.slane %v431_v11, %v2108_v53  ;;  %v584_v37 = vsel %vm495_vm2, %v583_v22, %v579_v17 }
  0xe8   : > { %v348_v29 = vpop.xlane.xlu0 %347  ;;  %v425_v35 = vmul.f32 0.00390625, %v369_v23  ;;  %v550_v23 = vsel %vm502_vm3, %v549_v13, %v545_v57  ;;  %v510_v53 = vsel %vm509_vm4, %v508_v51, %v503_v14 }
  0xe9   : > { %v418_v55 = vmul.f32 0.00390625, %v348_v29  ;;  %v613_v29 = vrot.slane %v430_v21, %v2106_v52 }
  0xea   : > { %v588_v45 = vrot.slane %v425_v35, %v2114_v32 }
  0xeb   : > { %v2098_v34 = vpop.xlane.xlu1 %326  ;;  %v554_v59 = vrot.slane %v418_v55, %v2116_v7 }
  0xec   : > { %v2100_v36 = vpop.xlane.xlu0 %389  ;;  %v411_v15 = vmul.f32 0.00390625, %v2098_v34  ;;  %v618_v34 = vsel %vm488_vm1, %v617_v56, %v613_v29  ;;  %v589_v16 = vsel %vm502_vm3, %v588_v45, %v584_v37 }
  0xed   : > { %v432_v11 = vmul.f32 0.00390625, %v2100_v36  ;;  %v555_v36 = vsel %vm509_vm4, %v554_v59, %v550_v23 }
  0xef   : > { %v2102_v46 = vpop.xlane.xlu1 %371 }
  0xf0   : > { %v2104_v49 = vpop.xlane.xlu0 %350  ;;  %v426_v48 = vmul.f32 0.00390625, %v2102_v46  ;;  %v515_v46 = vrot.slane %v411_v15, %v2120_v30 }
  0xf1   : > { %v419_v1 = vmul.f32 0.00390625, %v2104_v49 }
  0xf2   : > { %v593_v49 = vrot.slane %v426_v48, %v2116_v7  ;;  %v517_v57 = vsel %vm516_vm5, %v515_v46, %v510_v53 }
  0xf3   : > { %v2112_v33 = vpop.xlane.xlu1 %329 }
  0xf4   : > { %v2118_v3 = vpop.xlane.xlu0 %392  ;;  %v412_v20 = vmul.f32 0.00390625, %v2112_v33  ;;  %v594_v31 = vsel %vm509_vm4, %v593_v49, %v589_v16  ;;  %v732_v49 = vld [vmem:[%s2467_s3] sm:$0xff] }
  0xf5   : > { %v433_v12 = vmul.f32 0.00390625, %v2118_v3  ;;  %v622_v3 = vrot.slane %v432_v11, %v2110_v54 }
  0xf7   : > { %v375_v47 = vpop.xlane.xlu1 %374  ;;  %v627_v33 = vrot.slane %v433_v12, %v2114_v32  ;;  %v623_v48 = vsel %vm495_vm2, %v622_v3, %v618_v34  ;;  %v747_v3 = vld [vmem:[%s2468_s4 + $0x38] sm:$0xff] }
  0xf8   : > { %v354_v39 = vpop.xlane.xlu0 %353  ;;  %v427_v52 = vmul.f32 0.00390625, %v375_v47 }
  0xf9   : > { %v420_v60 = vmul.f32 0.00390625, %v354_v39  ;;  %v559_v39 = vrot.slane %v419_v1, %v2120_v30 }
  0xfa   : > { %v598_v51 = vrot.slane %v427_v52, %v2120_v30 }
  0xfb   : > { %v333_v41 = vpop.xlane.xlu1 %332  ;;  %v564_v55 = vrot.slane %v420_v60, %v2122_v61  ;;  %v560_v15 = vsel %vm516_vm5, %v559_v39, %v555_v36  ;;  %v742_v36 = vld [vmem:[%s2468_s4 + $0x10] sm:$0xff]  ;;  %v743_v39 = vld [vmem:[%s2468_s4 + $0x18] sm:$0xff] }
  0xfc   : > { %v396_v28 = vpop.xlane.xlu0 %395  ;;  %v413_v47 = vmul.f32 0.00390625, %v333_v41  ;;  %v522_v41 = vrot.slane %v412_v20, %v2122_v61  ;;  %v734_v20 = vld [vmem:[%s2467_s3 + $0x10] sm:$0xff] }
  0xfd   : > { %v434_v21 = vmul.f32 0.00390625, %v396_v28  ;;  %v565_v37 = vsel %vm523_vm6, %v564_v55, %v560_v15  ;;  %1548 = vmatprep.mubr.msk.f32.mxu1 %vm788_vm12, %v734_v20 }
  0xfe   : > { %v529_v14 = vrot.slane %v413_v47, %v2140_v44  ;;  %v524_v11 = vsel %vm523_vm6, %v522_v41, %v517_v57  ;;  %v744_v47 = vld [vmem:[%s2468_s4 + $0x20] sm:$0xff]  ;;  %v737_v41 = vld [vmem:[%s2467_s3 + $0x28] sm:$0xff] }
  0xff   : > { %v378_v0 = vpop.xlane.xlu1 %377  ;;  %v632_v17 = vrot.slane %v434_v21, %v2116_v7  ;;  %v628_v7 = vsel %vm502_vm3, %v627_v33, %v623_v48  ;;  %v740_v21 = vld [vmem:[%s2468_s4] sm:$0xff] }
 0x100   : > { %v357_v10 = vpop.xlane.xlu0 %356  ;;  %v428_v58 = vmul.f32 0.00390625, %v378_v0  ;;  %v599_v0 = vsel %vm516_vm5, %v598_v51, %v594_v31  ;;  %v531_v60 = vsel %vm530_vm7, %v529_v14, %v524_v11  ;;  %750 = vperm.xlu1 %1616, %v740_v21   ;;  %v736_v31 = vld [vmem:[%s2467_s3 + $0x20] sm:$0xff] }
 0x101   : > { %v421_v13 = vmul.f32 0.00390625, %v357_v10 }
 0x102   : > { %v603_v28 = vrot.slane %v428_v58, %v2122_v61 }
 0x103   : > { %v381_v35 = vpop.xlane.xlu1 %380  ;;  %v569_v56 = vrot.slane %v421_v13, %v2140_v44 }
 0x104   : > { %v429_v40 = vmul.f32 0.00390625, %v381_v35  ;;  %v399_v22 = vpop.xlane.xlu0 %398  ;;  %v604_v59 = vsel %vm523_vm6, %v603_v28, %v599_v0  ;;  %v741_v35 = vld [vmem:[%s2468_s4 + $0x8] sm:$0xff] }
 0x105   : > { %v435_v50 = vmul.f32 0.00390625, %v399_v22  ;;  %v570_v1 = vsel %vm530_vm7, %v569_v56, %v565_v37  ;;  %755 = vperm.xlu1 %1616, %v741_v35   ;;  %v746_v22 = vld [vmem:[%s2468_s4 + $0x30] sm:$0xff]  ;;  %v733_v28 = vld [vmem:[%s2467_s3 + $0x8] sm:$0xff]  ;;  %v735_v56 = vld [vmem:[%s2467_s3 + $0x18] sm:$0xff] }
 0x106   : > { %v608_v54 = vrot.slane %v429_v40, %v2140_v44  ;;  %v650_v58 = vsel %vm649_vm8, %v570_v1, %v531_v60  ;;  %v745_v40 = vld [vmem:[%s2468_s4 + $0x28] sm:$0xff] }
 0x107   : > { %v405_v23 = vpop.xlane.xlu1 %404  ;;  %v637_v29 = vrot.slane %v435_v50, %v2120_v30  ;;  %v633_v30 = vsel %vm509_vm4, %v632_v17, %v628_v7  ;;  %v738_v17 = vld [vmem:[%s2467_s3 + $0x30] sm:$0xff] }
 0x108   : > { %v402_v32 = vpop.xlane.xlu0 %401  ;;  %v437_v45 = vmul.f32 0.00390625, %v405_v23  ;;  %v609_v34 = vsel %vm530_vm7, %v608_v54, %v604_v59  ;;  %v739_v54 = vld [vmem:[%s2467_s3 + $0x38] sm:$0xff]  ;;  %v1781_v23 = vmov 1  }
 0x109   : > { %v436_v53 = vmul.f32 0.00390625, %v402_v32  ;;  %v638_v46 = vsel %vm516_vm5, %v637_v29, %v633_v30  ;;  %v652_v13 = vsel %vm651_vm9, %v609_v34, %v650_v58  ;;  %760 = vperm.xlu1 %1616, %v742_v36   ;;  %1618 = vset.pattern.permute.xlu0 %v1781_v23 }
 0x10a   : > { %v647_v10 = vrot.slane %v437_v45, %v2140_v44 }
 0x10b   : > { %v642_v52 = vrot.slane %v436_v53, %v2122_v61  ;;  %v438_v61 = vld [vmem:[%s2465_s1] sm:$0xf] }
 0x10d   : > { %v643_v12 = vsel %vm523_vm6, %v642_v52, %v638_v46  ;;  %765 = vperm.xlu1 %1616, %v743_v39  }
 0x10e   : > { %v648_v44 = vsel %vm530_vm7, %v647_v10, %v643_v12 }
 0x10f   : > { %v654_v16 = vsel %vm653_vm10, %v648_v44, %v652_v13 }
 0x110   : > { %1539 = vmatpush3.xpose.msk.msra.mxu0 %vm655_vm11, %v654_v16  ;;  %v443_v51 = vpop.permute.xlu0 %442 }
 0x111   : > { %770 = vperm.xlu1 %1616, %v744_v47  }
 0x113   : > { %1541 = vmatmul.mubr.msk.f32.vlgmr.msra.gmra.mrb[0].mxu0 %vm655_vm11, %v438_v61 }
 0x114   : > { %1545 = vmatprep.mubr.msk.f32.mxu0 %vm788_vm12, %v732_v49 }
 0x115   : > { %775 = vperm.xlu1 %1616, %v745_v40  }
 0x119   : > { %780 = vperm.xlu1 %1616, %v746_v22  }
 0x11d   : > { %785 = vperm.xlu1 %1616, %v747_v3   ;;  %v1782_v3 = vmov 2  }
 0x17f   : > { %v751_v15 = vpop.permute.xlu1 %750 }
 0x184   : > { %v756_v14 = vpop.permute.xlu1 %755 }
 0x188   : > { %v761_v29 = vpop.permute.xlu1 %760 }
 0x18c   : > { %v766_v32 = vpop.permute.xlu1 %765 }
 0x190   : > { %v771_v61 = vpop.permute.xlu1 %770 }
 0x194   : > { %v776_v20 = vpop.permute.xlu1 %775 }
 0x1e6   : > { %v727_v55 = vpop.f32.mrb[0].mxu0 }
 0x1e7   : > { %v728_v50 = vadd.f32 %v727_v55, %v443_v51  ;;  %v1542_v57 = vpop.f32.mrb[1].mxu0  ;;  %v1783_v55 = vmov 3  }
 0x1e9   : > { %v731_v33 = vmax.f32 %v728_v50, 0.0  ;;  %v781_v50 = vpop.permute.xlu1 %780 }
 0x1eb   : > { %1543 = vmatprep.subr.msk.mxu0 %vm813_vm13, %v731_v33  ;;  %1557 = vmatprep.subr.msk.mxu1 %vm813_vm13, %v731_v33 }
 0x1ec   : > { %1544 = vmatpush3.msk.msra.mxu0 %vm813_vm13, %v731_v33  ;;  %1558 = vmatpush3.msk.msra.mxu1 %vm813_vm13, %v731_v33 }
 0x1ed   : > { %1546 = vmatmul.mubr.msk.f32.vlgmr.msra.gmra.mrb[2].mxu0 %vm788_vm12, %v733_v28  ;;  %1549 = vmatmul.mubr.msk.f32.vlgmr.msra.gmra.mrb[0].mxu1 %vm788_vm12, %v735_v56  ;;  %v2508_v28 = vmov 0  }
 0x1ee   : > { %1551 = vmatprep.mubr.msk.f32.mxu1 %vm788_vm12, %v736_v31  ;;  %v786_v31 = vpop.permute.xlu1 %785 }
 0x1f1   : > { %1552 = vmatmul.mubr.msk.f32.gmra.mrb[2].mxu1 %vm788_vm12, %v737_v41 }
 0x1f2   : > { %1554 = vmatprep.mubr.msk.f32.mxu1 %vm788_vm12, %v738_v17 }
 0x1f5   : > { %1555 = vmatmul.mubr.msk.f32.gmra.mrb[4].mxu1 %vm788_vm12, %v739_v54 }
 0x2c0   : > { %v1547_v45 = vpop.f32.mrb[2].mxu0  ;;  %v1550_v48 = vpop.f32.mrb[0].mxu1 }
 0x2c1   : > { %v889_v0 = vadd.f32 %v1547_v45, %v756_v14  ;;  %v899_v37 = vadd.f32 %v1550_v48, %v766_v32  ;;  %v883_v53 = vpop.f32.mrb[3].mxu0  ;;  %v893_v7 = vpop.f32.mrb[1].mxu1 }
 0x2c2   : > { %v884_v52 = vadd.f32 %v883_v53, %v751_v15  ;;  %v894_v46 = vadd.f32 %v893_v7, %v761_v29 }
 0x2c3   : > { %v1414_v59 = vmul.f32 -1.442695, %v889_v0  ;;  %v1416_v1 = vmul.f32 -1.442695, %v899_v37 }
 0x2c4   : > { %v1553_v10 = vpop.f32.mrb[2].mxu1  ;;  %v1413_v60 = vmul.f32 -1.442695, %v884_v52  ;;  %v1415_v16 = vmul.f32 -1.442695, %v894_v46 }
 0x2c5   : > { %1645 = vpow2.f32 %v1414_v59  ;;  %v903_v11 = vpop.f32.mrb[3].mxu1  ;;  %v909_v35 = vadd.f32 %v1553_v10, %v776_v20 }
 0x2c6   : > { %1647 = vpow2.f32 %v1416_v1  ;;  %v904_v51 = vadd.f32 %v903_v11, %v771_v61 }
 0x2c7   : > { %1649 = vpow2.f32 %v1413_v60  ;;  %v1418_v40 = vmul.f32 -1.442695, %v909_v35 }
 0x2c8   : > { %v1556_v30 = vpop.f32.mrb[4].mxu1  ;;  %v1417_v57 = vmul.f32 -1.442695, %v904_v51 }
 0x2c9   : > { %v913_v34 = vpop.f32.mrb[5].mxu1  ;;  %v919_v17 = vadd.f32 %v1556_v30, %v786_v31 }
 0x2ca   : > { %v914_v14 = vadd.f32 %v913_v34, %v781_v50 }
 0x2cb   : > { %v1420_v15 = vmul.f32 -1.442695, %v919_v17  ;;  %v2512_v17 = vld [vmem:[#allocation10_spill] sm:$0xff] }
 0x2cc   : > { %v1419_v32 = vmul.f32 -1.442695, %v914_v14 }
 0x2cf   : > { %v1646_v12 = vpop.eup %1645 }
 0x2d0   : > { %v1648_v58 = vpop.eup %1647  ;;  %v947_v44 = vadd.f32 1.0, %v1646_v12 }
 0x2d1   : > { %v949_v13 = vadd.f32 1.0, %v1648_v58  ;;  %v1650_v49 = vpop.eup %1649 }
 0x2d2   : > { %1651 = vrcp.f32 %v947_v44  ;;  %v946_v39 = vadd.f32 1.0, %v1650_v49  ;;  %v2509_v49 = vld [vmem:[#allocation12_spill] sm:$0xff] }
 0x2d3   : > { %1653 = vrcp.f32 %v949_v13 }
 0x2d4   : > { %1655 = vpow2.f32 %v1415_v16 }
 0x2d5   : > { %1657 = vrcp.f32 %v946_v39 }
 0x2d6   : > { %1659 = vpow2.f32 %v1418_v40 }
 0x2dc   : > { %v1652_v21 = vpop.eup %1651 }
 0x2dd   : > { %v1654_v36 = vpop.eup %1653  ;;  %993 = vperm.xlu1 %1616, %v1652_v21  }
 0x2de   : > { %1088 = vperm.xlu0 %1618, %v1654_v36   ;;  %v1656_v47 = vpop.eup %1655 }
 0x2df   : > { %v948_v22 = vadd.f32 1.0, %v1656_v47  ;;  %v1658_v33 = vpop.eup %1657  ;;  %v1422_v47 = vld [vmem:[%s1927_s28 + $0x88] sm:$0xff] }
 0x2e0   : > { %v1660_v56 = vpop.eup %1659 }
 0x2e1   : > { %1003 = vperm.xlu1 %1616, %v1654_v36   ;;  %1661 = vrcp.f32 %v948_v22  ;;  %v951_v54 = vadd.f32 1.0, %v1660_v56 }
 0x2e2   : > { %1619 = vset.pattern.permute.xlu0 %v1782_v3  ;;  %1663 = vpow2.f32 %v1417_v57  ;;  %v1453_v57 = vld [vmem:[%s1927_s28 + $0x100] sm:$0xff] }
 0x2e3   : > { %1162 = vperm.xlu0 %1619, %v1652_v21   ;;  %1665 = vrcp.f32 %v951_v54 }
 0x2e4   : > { %1667 = vpow2.f32 %v1420_v15  ;;  %v2513_v15 = vld [vmem:[#allocation11_spill] sm:$0xff] }
 0x2e5   : > { %1617 = vset.pattern.permute.xlu1 %v1781_v23  ;;  %1669 = vpow2.f32 %v1419_v32  ;;  %v1458_v32 = vld [vmem:[%s1927_s28 + $0x128] sm:$0xff] }
 0x2e6   : > { %1080 = vperm.xlu1 %1617, %v1652_v21  }
 0x2e7   : > { %1622 = vset.pattern.permute.xlu0 %v1783_v55 }
 0x2e8   : > { %1252 = vperm.xlu0 %1622, %v1654_v36  }
 0x2ea   : > { %1620 = vset.pattern.permute.xlu1 %v1782_v3 }
 0x2eb   : > { %1170 = vperm.xlu1 %1620, %v1654_v36   ;;  %v1662_v41 = vpop.eup %1661  ;;  %v2511_v36 = vld [vmem:[#allocation9_spill] sm:$0xff] }
 0x2ec   : > { %1623 = vset.pattern.permute.xlu0 %v2508_v28  ;;  %v1664_v29 = vpop.eup %1663 }
 0x2ed   : > { %988 = vperm.xlu0 %1623, %v1658_v33   ;;  %v950_v45 = vadd.f32 1.0, %v1664_v29  ;;  %v1666_v48 = vpop.eup %1665  ;;  %v1457_v29 = vld [vmem:[%s1927_s28 + $0x120] sm:$0xff] }
 0x2ee   : > { %v1668_v0 = vpop.eup %1667 }
 0x2ef   : > { %1621 = vset.pattern.permute.xlu1 %v1783_v55  ;;  %1671 = vrcp.f32 %v950_v45  ;;  %v953_v37 = vadd.f32 1.0, %v1668_v0  ;;  %v1670_v53 = vpop.eup %1669 }
 0x2f0   : > { %1244 = vperm.xlu1 %1621, %v1652_v21   ;;  %v952_v59 = vadd.f32 1.0, %v1670_v53  ;;  %v2510_v21 = vld [vmem:[#allocation8_spill] sm:$0xff]  ;;  %v2514_v53 = vld [vmem:[#allocation15_spill] sm:$0xff] }
 0x2f1   : > { %998 = vperm.xlu0 %1623, %v1662_v41   ;;  %1673 = vrcp.f32 %v953_v37 }
 0x2f2   : > { %1675 = vrcp.f32 %v952_v59  ;;  %v2515_v59 = vld [vmem:[#allocation16_spill] sm:$0xff] }
 0x2f4   : > { %1625 = vset.pattern.permute.xlu1 %v1781_v23 }
 0x2f5   : > { %1624 = vset.pattern.permute.xlu0 %v1781_v23  ;;  %1084 = vperm.xlu1 %1625, %v1662_v41  }
 0x2f6   : > { %1076 = vperm.xlu0 %1624, %v1658_v33  }
 0x2f9   : > { %1626 = vset.pattern.permute.xlu1 %v1782_v3  ;;  %v1672_v7 = vpop.eup %1671 }
 0x2fa   : > { %1627 = vset.pattern.permute.xlu0 %v1783_v55  ;;  %1158 = vperm.xlu1 %1626, %v1658_v33  }
 0x2fb   : > { %1240 = vperm.xlu0 %1627, %v1658_v33   ;;  %v1674_v1 = vpop.eup %1673  ;;  %v1454_v33 = vld [vmem:[%s1927_s28 + $0x108] sm:$0xff] }
 0x2fc   : > { %v1676_v10 = vpop.eup %1675 }
 0x2fe   : > { %1166 = vperm.xlu1 %1626, %v1662_v41  }
 0x2ff   : > { %1630 = vset.pattern.permute.xlu0 %v1781_v23 }
 0x300   : > { %1096 = vperm.xlu0 %1630, %v1666_v48  }
 0x302   : > { %1628 = vset.pattern.permute.xlu1 %v1783_v55 }
 0x303   : > { %1248 = vperm.xlu1 %1628, %v1662_v41  }
 0x304   : > { %1632 = vset.pattern.permute.xlu0 %v1783_v55 }
 0x305   : > { %1260 = vperm.xlu0 %1632, %v1666_v48  }
 0x307   : > { %1629 = vset.pattern.permute.xlu1 %v2508_v28 }
 0x308   : > { %1013 = vperm.xlu1 %1629, %v1666_v48  }
 0x309   : > { %1633 = vset.pattern.permute.xlu0 %v2508_v28 }
 0x30a   : > { %1008 = vperm.xlu0 %1633, %v1672_v7  }
 0x30c   : > { %1631 = vset.pattern.permute.xlu1 %v1782_v3 }
 0x30d   : > { %1178 = vperm.xlu1 %1631, %v1666_v48  }
 0x30e   : > { %1635 = vset.pattern.permute.xlu0 %v1782_v3 }
 0x30f   : > { %1174 = vperm.xlu0 %1635, %v1672_v7  }
 0x311   : > { %1634 = vset.pattern.permute.xlu1 %v1781_v23 }
 0x312   : > { %1092 = vperm.xlu1 %1634, %v1672_v7  }
 0x313   : > { %1638 = vset.pattern.permute.xlu0 %v1781_v23 }
 0x314   : > { %1104 = vperm.xlu0 %1638, %v1674_v1  }
 0x316   : > { %1636 = vset.pattern.permute.xlu1 %v1783_v55 }
 0x317   : > { %1256 = vperm.xlu1 %1636, %v1672_v7  }
 0x318   : > { %1640 = vset.pattern.permute.xlu0 %v2508_v28 }
 0x319   : > { %1018 = vperm.xlu0 %1640, %v1676_v10  }
 0x31b   : > { %1637 = vset.pattern.permute.xlu1 %v2508_v28 }
 0x31c   : > { %1023 = vperm.xlu1 %1637, %v1674_v1  }
 0x31d   : > { %1642 = vset.pattern.permute.xlu0 %v1782_v3 }
 0x31e   : > { %1182 = vperm.xlu0 %1642, %v1676_v10  }
 0x320   : > { %1639 = vset.pattern.permute.xlu1 %v1782_v3 }
 0x321   : > { %1186 = vperm.xlu1 %1639, %v1674_v1  }
 0x322   : > { %1644 = vset.pattern.permute.xlu0 %v1783_v55 }
 0x323   : > { %1268 = vperm.xlu0 %1644, %v1674_v1  }
 0x325   : > { %1641 = vset.pattern.permute.xlu1 %v1781_v23 }
 0x326   : > { %1100 = vperm.xlu1 %1641, %v1676_v10  }
 0x32a   : > { %1643 = vset.pattern.permute.xlu1 %v1783_v55 }
 0x32b   : > { %1264 = vperm.xlu1 %1643, %v1676_v10  }
 0x35c   : > { %v994_v11 = vpop.permute.xlu1 %993 }
 0x35d   : > { %v1089_v30 = vpop.permute.xlu0 %1088  ;;  %v1028_v52 = vmul.f32 %v994_v11, %v1950_v8  ;;  %v1029_v34 = vmul.f32 %v994_v11, %v1953_v9  ;;  %v2516_v11 = vld [vmem:[#allocation13_spill] sm:$0xff] }
 0x35e   : > { %v1113_v60 = vmul.f32 %v1089_v30, %v1980_v24  ;;  %v1114_v46 = vmul.f32 %v1089_v30, %v1983_v25 }
 0x35f   : > { %1044 = vst [vmem:[%s2287_s13 + $0x10] sm:$0xff] %v1028_v52  ;;  %1045 = vst [vmem:[%s2287_s13 + $0x18] sm:$0xff] %v1029_v34  ;;  %v2517_v52 = vld [vmem:[#allocation14_spill] sm:$0xff] }
 0x360   : > { %1443 = vst [vmem:[%s2287_s13 + $0xb0] sm:$0xff] %v1113_v60  ;;  %1444 = vst [vmem:[%s2287_s13 + $0xb8] sm:$0xff] %v1114_v46  ;;  %v1004_v8 = vpop.permute.xlu1 %1003  ;;  %v2518_v46 = vld [vmem:[#allocation21_spill] sm:$0xff] }
 0x361   : > { %v1032_v9 = vmul.f32 %v1004_v8, %v1986_v26  ;;  %v1033_v24 = vmul.f32 %v1004_v8, %v1989_v27 }
 0x362   : > { %v1163_v25 = vpop.permute.xlu0 %1162 }
 0x363   : > { %1048 = vst [vmem:[%s2287_s13 + $0x30] sm:$0xff] %v1032_v9  ;;  %1049 = vst [vmem:[%s2287_s13 + $0x38] sm:$0xff] %v1033_v24  ;;  %v1191_v23 = vmul.f32 %v1163_v25, %v1970_v18  ;;  %v1192_v12 = vmul.f32 %v1163_v25, %v1973_v19  ;;  %v2519_v9 = vld [vmem:[#allocation22_spill] sm:$0xff] }
 0x364   : > { %v980_v25 = vld [vmem:[%s1927_s28 + $0x50] sm:$0xff] }
 0x365   : > { %1471 = vst [vmem:[%s2287_s13 + $0x110] sm:$0xff] %v1191_v23  ;;  %1472 = vst [vmem:[%s2287_s13 + $0x118] sm:$0xff] %v1192_v12  ;;  %v1081_v58 = vpop.permute.xlu1 %1080  ;;  %v981_v23 = vld [vmem:[%s1927_s28 + $0x58] sm:$0xff] }
 0x366   : > { %v1109_v44 = vmul.f32 %v1081_v58, %v1942_v5  ;;  %v1110_v26 = vmul.f32 %v1081_v58, %v1945_v6  ;;  %v978_v58 = vld [vmem:[%s1927_s28 + $0x40] sm:$0xff] }
 0x367   : > { %v1253_v27 = vpop.permute.xlu0 %1252 }
 0x368   : > { %1439 = vst [vmem:[%s2287_s13 + $0x90] sm:$0xff] %v1109_v44  ;;  %1440 = vst [vmem:[%s2287_s13 + $0x98] sm:$0xff] %v1110_v26  ;;  %v1277_v13 = vmul.f32 %v1253_v27, %v2048_v62  ;;  %v1278_v18 = vmul.f32 %v1253_v27, %v2051_v63  ;;  %v979_v44 = vld [vmem:[%s1927_s28 + $0x48] sm:$0xff] }
 0x36a   : > { %1507 = vst [vmem:[%s2287_s13 + $0x1b0] sm:$0xff] %v1277_v13  ;;  %1508 = vst [vmem:[%s2287_s13 + $0x1b8] sm:$0xff] %v1278_v18  ;;  %v1171_v19 = vpop.permute.xlu1 %1170 }
 0x36b   : > { %v1195_v16 = vmul.f32 %v1171_v19, %v2016_v42  ;;  %v1196_v5 = vmul.f32 %v1171_v19, %v2019_v43 }
 0x36c   : > { %v989_v6 = vpop.permute.xlu0 %988 }
 0x36d   : > { %1475 = vst [vmem:[%s2287_s13 + $0x130] sm:$0xff] %v1195_v16  ;;  %1476 = vst [vmem:[%s2287_s13 + $0x138] sm:$0xff] %v1196_v5  ;;  %v1026_v62 = vmul.f32 %v989_v6, %v1936_v2  ;;  %v1027_v63 = vmul.f32 %v989_v6, %v1939_v4  ;;  %v1425_v2 = vld [vmem:[%s1927_s28 + $0xa0] sm:$0xff]  ;;  %v1426_v4 = vld [vmem:[%s1927_s28 + $0xa8] sm:$0xff] }
 0x36e   : > { %v1461_v5 = vld [vmem:[%s1927_s28 + $0x140] sm:$0xff]  ;;  %v1462_v6 = vld [vmem:[%s1927_s28 + $0x148] sm:$0xff] }
 0x36f   : > { %1042 = vst [vmem:[%s2287_s13] sm:$0xff] %v1026_v62  ;;  %1043 = vst [vmem:[%s2287_s13 + $0x8] sm:$0xff] %v1027_v63  ;;  %v1245_v61 = vpop.permute.xlu1 %1244  ;;  %v2520_v62 = vld [vmem:[#allocation17_spill] sm:$0xff] }
 0x370   : > { %v1273_v42 = vmul.f32 %v1245_v61, %v2008_v38  ;;  %v1274_v43 = vmul.f32 %v1245_v61, %v2509_v49  ;;  %v999_v20 = vpop.permute.xlu0 %998  ;;  %v1421_v38 = vld [vmem:[%s1927_s28 + $0x80] sm:$0xff]  ;;  %v2521_v61 = vld [vmem:[#allocation18_spill] sm:$0xff] }
 0x371   : > { %v1030_v35 = vmul.f32 %v999_v20, %v2510_v21  ;;  %v1031_v39 = vmul.f32 %v999_v20, %v2511_v36  ;;  %v1429_v21 = vld [vmem:[%s1927_s28 + $0xc0] sm:$0xff] }
 0x372   : > { %1503 = vst [vmem:[%s2287_s13 + $0x190] sm:$0xff] %v1273_v42  ;;  %1504 = vst [vmem:[%s2287_s13 + $0x198] sm:$0xff] %v1274_v43 }
 0x373   : > { %1046 = vst [vmem:[%s2287_s13 + $0x20] sm:$0xff] %v1030_v35  ;;  %1047 = vst [vmem:[%s2287_s13 + $0x28] sm:$0xff] %v1031_v39  ;;  %v1430_v35 = vld [vmem:[%s1927_s28 + $0xc8] sm:$0xff] }
 0x374   : > { %v1085_v40 = vpop.permute.xlu1 %1084 }
 0x375   : > { %v1111_v22 = vmul.f32 %v1425_v2, %v1085_v40  ;;  %v1112_v3 = vmul.f32 %v1426_v4, %v1085_v40  ;;  %v1077_v51 = vpop.permute.xlu0 %1076  ;;  %v2523_v40 = vld [vmem:[#allocation20_spill] sm:$0xff] }
 0x376   : > { %v1107_v55 = vmul.f32 %v1421_v38, %v1077_v51  ;;  %v1108_v50 = vmul.f32 %v1422_v47, %v1077_v51  ;;  %v2522_v38 = vld [vmem:[#allocation19_spill] sm:$0xff]  ;;  %v1494_v51 = vld [vmem:[%s1927_s28 + $0x1c8] sm:$0xff] }
 0x377   : > { %1441 = vst [vmem:[%s2287_s13 + $0xa0] sm:$0xff] %v1111_v22  ;;  %1442 = vst [vmem:[%s2287_s13 + $0xa8] sm:$0xff] %v1112_v3  ;;  %v1493_v3 = vld [vmem:[%s1927_s28 + $0x1c0] sm:$0xff] }
 0x378   : > { %1437 = vst [vmem:[%s2287_s13 + $0x80] sm:$0xff] %v1107_v55  ;;  %1438 = vst [vmem:[%s2287_s13 + $0x88] sm:$0xff] %v1108_v50  ;;  %v982_v50 = vld [vmem:[%s1927_s28 + $0x60] sm:$0xff] }
 0x379   : > { %v1159_v28 = vpop.permute.xlu1 %1158 }
 0x37a   : > { %v1189_v56 = vmul.f32 %v1453_v57, %v1159_v28  ;;  %v1190_v31 = vmul.f32 %v1454_v33, %v1159_v28  ;;  %v1241_v41 = vpop.permute.xlu0 %1240  ;;  %v983_v57 = vld [vmem:[%s1927_s28 + $0x68] sm:$0xff] }
 0x37b   : > { %v1271_v54 = vmul.f32 %v1241_v41, %v2512_v17  ;;  %v1272_v14 = vmul.f32 %v1241_v41, %v2513_v15  ;;  %v984_v17 = vld [vmem:[%s1927_s28 + $0x70] sm:$0xff] }
 0x37c   : > { %1469 = vst [vmem:[%s2287_s13 + $0x100] sm:$0xff] %v1189_v56  ;;  %1470 = vst [vmem:[%s2287_s13 + $0x108] sm:$0xff] %v1190_v31 }
 0x37d   : > { %1501 = vst [vmem:[%s2287_s13 + $0x180] sm:$0xff] %v1271_v54  ;;  %1502 = vst [vmem:[%s2287_s13 + $0x188] sm:$0xff] %v1272_v14  ;;  %v1167_v45 = vpop.permute.xlu1 %1166  ;;  %v985_v54 = vld [vmem:[%s1927_s28 + $0x78] sm:$0xff]  ;;  %v1465_v14 = vld [vmem:[%s1927_s28 + $0x160] sm:$0xff] }
 0x37e   : > { %v1193_v48 = vmul.f32 %v1457_v29, %v1167_v45  ;;  %v1194_v0 = vmul.f32 %v1458_v32, %v1167_v45  ;;  %v1466_v29 = vld [vmem:[%s1927_s28 + $0x168] sm:$0xff] }
 0x37f   : > { %v1097_v37 = vpop.permute.xlu0 %1096 }
 0x380   : > { %1473 = vst [vmem:[%s2287_s13 + $0x120] sm:$0xff] %v1193_v48  ;;  %1474 = vst [vmem:[%s2287_s13 + $0x128] sm:$0xff] %v1194_v0  ;;  %v1117_v7 = vmul.f32 %v1097_v37, %v2514_v53  ;;  %v1118_v1 = vmul.f32 %v1097_v37, %v2515_v59  ;;  %v1467_v53 = vld [vmem:[%s1927_s28 + $0x170] sm:$0xff] }
 0x382   : > { %1447 = vst [vmem:[%s2287_s13 + $0xd0] sm:$0xff] %v1117_v7  ;;  %1448 = vst [vmem:[%s2287_s13 + $0xd8] sm:$0xff] %v1118_v1  ;;  %v1249_v10 = vpop.permute.xlu1 %1248  ;;  %v1468_v7 = vld [vmem:[%s1927_s28 + $0x178] sm:$0xff]  ;;  %v1499_v1 = vld [vmem:[%s1927_s28 + $0x1f0] sm:$0xff] }
 0x383   : > { %v1275_v30 = vmul.f32 %v1249_v10, %v2516_v11  ;;  %v1276_v34 = vmul.f32 %v1249_v10, %v2517_v52  ;;  %v1500_v10 = vld [vmem:[%s1927_s28 + $0x1f8] sm:$0xff] }
 0x384   : > { %v1261_v60 = vpop.permute.xlu0 %1260 }
 0x385   : > { %1505 = vst [vmem:[%s2287_s13 + $0x1a0] sm:$0xff] %v1275_v30  ;;  %1506 = vst [vmem:[%s2287_s13 + $0x1a8] sm:$0xff] %v1276_v34  ;;  %v1281_v8 = vmul.f32 %v1261_v60, %v2518_v46  ;;  %v1282_v24 = vmul.f32 %v1261_v60, %v2519_v9  ;;  %v1433_v46 = vld [vmem:[%s1927_s28 + $0xe0] sm:$0xff] }
 0x387   : > { %1511 = vst [vmem:[%s2287_s13 + $0x1d0] sm:$0xff] %v1281_v8  ;;  %1512 = vst [vmem:[%s2287_s13 + $0x1d8] sm:$0xff] %v1282_v24  ;;  %v1014_v12 = vpop.permute.xlu1 %1013  ;;  %v1434_v8 = vld [vmem:[%s1927_s28 + $0xe8] sm:$0xff] }
 0x388   : > { %v1036_v26 = vmul.f32 %v1014_v12, %v980_v25  ;;  %v1037_v27 = vmul.f32 %v1014_v12, %v981_v23  ;;  %v1497_v23 = vld [vmem:[%s1927_s28 + $0x1e0] sm:$0xff]  ;;  %v1498_v12 = vld [vmem:[%s1927_s28 + $0x1e8] sm:$0xff]  ;;  %s1784_s28 = smov [#allocation5]  }
 0x389   : > { %v1009_v13 = vpop.permute.xlu0 %1008  ;;  %s1711_s15 = sshll.u32 %s1784_s28, 4  ;;  %s1712_s15 = int_to_ptr.vmem [resolvable:$false] %s1711_s15 }
 0x38a   : > { %1052 = vst [vmem:[%s2287_s13 + $0x50] sm:$0xff] %v1036_v26  ;;  %1053 = vst [vmem:[%s2287_s13 + $0x58] sm:$0xff] %v1037_v27  ;;  %v1034_v18 = vmul.f32 %v1009_v13, %v978_v58  ;;  %v1035_v19 = vmul.f32 %v1009_v13, %v979_v44  ;;  %s1713_s16 = scalar_lea.vmem %s1712_s15, 16384  ;;  %p1714_p8 = scmp.lt.s32.totalorder %s2418_s17, %s1712_s15 }
 0x38b   : > { %p1715_p10 = scmp.lt.s32.totalorder %s1713_s16, %s1707_s14 }
 0x38c   : > { %1050 = vst [vmem:[%s2287_s13 + $0x40] sm:$0xff] %v1034_v18  ;;  %1051 = vst [vmem:[%s2287_s13 + $0x48] sm:$0xff] %v1035_v19  ;;  %v1179_v16 = vpop.permute.xlu1 %1178 }
 0x38d   : > { %v1199_v63 = vmul.f32 %v1179_v16, %v2520_v62  ;;  %v1200_v42 = vmul.f32 %v1179_v16, %v2521_v61  ;;  %p1716_p0 = por %p1715_p10, %p1714_p8 }
 0x38e   : > { %v1175_v49 = vpop.permute.xlu0 %1174 }
 0x38f   : > { %1479 = vst [vmem:[%s2287_s13 + $0x150] sm:$0xff] %v1199_v63  ;;  %1480 = vst [vmem:[%s2287_s13 + $0x158] sm:$0xff] %v1200_v42  ;;  %v1197_v43 = vmul.f32 %v1461_v5, %v1175_v49  ;;  %v1198_v20 = vmul.f32 %v1462_v6, %v1175_v49  ;;  %p1717_p2 = pnand %p1716_p0, %p1710_p13 }
 0x391   : > { %1477 = vst [vmem:[%s2287_s13 + $0x140] sm:$0xff] %v1197_v43  ;;  %1478 = vst [vmem:[%s2287_s13 + $0x148] sm:$0xff] %v1198_v20  ;;  %v1093_v36 = vpop.permute.xlu1 %1092 }
 0x392   : > { %v1115_v39 = vmul.f32 %v1429_v21, %v1093_v36  ;;  %v1116_v2 = vmul.f32 %v1430_v35, %v1093_v36 }
 0x393   : > { %v1105_v4 = vpop.permute.xlu0 %1104 }
 0x394   : > { %1445 = vst [vmem:[%s2287_s13 + $0xc0] sm:$0xff] %v1115_v39  ;;  %1446 = vst [vmem:[%s2287_s13 + $0xc8] sm:$0xff] %v1116_v2  ;;  %v1121_v47 = vmul.f32 %v1105_v4, %v2522_v38  ;;  %v1122_v22 = vmul.f32 %v1105_v4, %v2523_v40 }
 0x396   : > { %1451 = vst [vmem:[%s2287_s13 + $0xf0] sm:$0xff] %v1121_v47  ;;  %1452 = vst [vmem:[%s2287_s13 + $0xf8] sm:$0xff] %v1122_v22  ;;  %v1257_v55 = vpop.permute.xlu1 %1256 }
 0x397   : > { %v1279_v33 = vmul.f32 %v1493_v3, %v1257_v55  ;;  %v1280_v28 = vmul.f32 %v1494_v51, %v1257_v55 }
 0x398   : > { %v1019_v56 = vpop.permute.xlu0 %1018 }
 0x399   : > { %1509 = vst [vmem:[%s2287_s13 + $0x1c0] sm:$0xff] %v1279_v33  ;;  %1510 = vst [vmem:[%s2287_s13 + $0x1c8] sm:$0xff] %v1280_v28  ;;  %v1038_v31 = vmul.f32 %v1019_v56, %v982_v50  ;;  %v1039_v41 = vmul.f32 %v1019_v56, %v983_v57 }
 0x39b   : > { %1054 = vst [vmem:[%s2287_s13 + $0x60] sm:$0xff] %v1038_v31  ;;  %1055 = vst [vmem:[%s2287_s13 + $0x68] sm:$0xff] %v1039_v41  ;;  %v1024_v15 = vpop.permute.xlu1 %1023 }
 0x39c   : > { %v1040_v32 = vmul.f32 %v1024_v15, %v984_v17  ;;  %v1041_v45 = vmul.f32 %v1024_v15, %v985_v54 }
 0x39d   : > { %v1183_v48 = vpop.permute.xlu0 %1182 }
 0x39e   : > { %1056 = vst [vmem:[%s2287_s13 + $0x70] sm:$0xff] %v1040_v32  ;;  %1057 = vst [vmem:[%s2287_s13 + $0x78] sm:$0xff] %v1041_v45  ;;  %v1201_v0 = vmul.f32 %v1465_v14, %v1183_v48  ;;  %v1202_v37 = vmul.f32 %v1466_v29, %v1183_v48 }
 0x3a0   : > { %1481 = vst [vmem:[%s2287_s13 + $0x160] sm:$0xff] %v1201_v0  ;;  %1482 = vst [vmem:[%s2287_s13 + $0x168] sm:$0xff] %v1202_v37  ;;  %v1187_v59 = vpop.permute.xlu1 %1186 }
 0x3a1   : > { %v1203_v11 = vmul.f32 %v1467_v53, %v1187_v59  ;;  %v1204_v30 = vmul.f32 %v1468_v7, %v1187_v59 }
 0x3a2   : > { %v1269_v52 = vpop.permute.xlu0 %1268 }
 0x3a3   : > { %1483 = vst [vmem:[%s2287_s13 + $0x170] sm:$0xff] %v1203_v11  ;;  %1484 = vst [vmem:[%s2287_s13 + $0x178] sm:$0xff] %v1204_v30  ;;  %v1285_v34 = vmul.f32 %v1499_v1, %v1269_v52  ;;  %v1286_v60 = vmul.f32 %v1500_v10, %v1269_v52 }
 0x3a5   : > { %1515 = vst [vmem:[%s2287_s13 + $0x1f0] sm:$0xff] %v1285_v34  ;;  %1516 = vst [vmem:[%s2287_s13 + $0x1f8] sm:$0xff] %v1286_v60  ;;  %v1101_v9 = vpop.permute.xlu1 %1100 }
 0x3a6   : > { %v1119_v24 = vmul.f32 %v1433_v46, %v1101_v9  ;;  %v1120_v25 = vmul.f32 %v1434_v8, %v1101_v9 }
 0x3a8   : > { %1449 = vst [vmem:[%s2287_s13 + $0xe0] sm:$0xff] %v1119_v24  ;;  %1450 = vst [vmem:[%s2287_s13 + $0xe8] sm:$0xff] %v1120_v25 }
 0x3aa   : > { %v1265_v58 = vpop.permute.xlu1 %1264 }
 0x3ab   : > { %v1283_v44 = vmul.f32 %v1497_v23, %v1265_v58  ;;  %v1284_v26 = vmul.f32 %v1498_v12, %v1265_v58 }
 0x3ad   : > { %1513 = vst [vmem:[%s2287_s13 + $0x1e0] sm:$0xff] %v1283_v44  ;;  %1514 = vst [vmem:[%s2287_s13 + $0x1e8] sm:$0xff] %v1284_v26 }
 0x3ae   : > { %1720 = shalt.err (!%p1717_p2)
}
 0x3af   : > { %s1721_s8 = scalar_lea.hbm %s2416_s12, 8192  ;;  %s1725_s10 = scalar_lea.hbm %s2469_s5, 16384 }
 0x3b0   : > { %p1722_p4 = scmp.ne.s32.totalorder %s2416_s12, %s1721_s8  ;;  %p1726_p9 = scmp.lt.u32.totalorder %s2416_s12, %s2469_s5 }
 0x3b1   : > { %p1727_p1 = scmp.lt.u32.totalorder %s1725_s10, %s1721_s8  ;;  %p1729_p6 = scmp.lt.u32.totalorder %s1721_s8, %s2416_s12 }
 0x3b2   : > { %p1723_p5 = pnand %p1722_p4, %p2524_p11 }
 0x3b3   : > { %p1728_p3 = por %p1727_p1, %p1726_p9 }
 0x3b4   : > { %p1724_p7 = pneg %p1723_p5 }
 0x3b5   : > { %p1730_p12 = por %p1729_p6, %p1728_p3 }
 0x3b7   : > { %p1731_p13 = pnand %p1730_p12, %p1724_p7 }
 0x3b9   : > { %1734 = shalt.err (!%p1731_p13)
}
 0x3ba   : > { %s1785_s25 = smov 256   ;;  %s1786_s26 = smov 16  }
 0x3bb   : > { %1561 = dma.vmem_to_hbm [thread:$0]  (%p2524_p11), %s2418_s17, 8192, %s2416_s12, %s1305_s22, %s1785_s25, %s1785_s25, %s1786_s26  }
 0x3bc PF: > { %s1334_s29 = sand.u32 1, %s1761_s18   ;;  %p2525_p8 = scmp.ne.s32.totalorder %s2491_s6, 0 }
 0x3bd   : > { %p2526_p10 = scmp.ge.s32.totalorder %s1773_s21, 2  ;;  %s1335_s14 = scalar_lea.sflag [#allocation4], %s1334_s29 }
 0x3bf   : > { %p1568_p0 = pnand %p2526_p10, %p2525_p8 }
 0x3c1   : > { %1756 = dma.done.wait (!%p1568_p0), %s1335_s14, 8192  }
 0x3c2   : > { %1758 = vsyncadd (!%p1568_p0), %s1335_s14, 4294959104  ;;  %p18_p2 = scmp.ge.s32.totalorder %s1842_s24, 4   ;;  %s2527_s18 = smov %s1765_s19 }
 0x3c3   : > { %s2528_s19 = smov %s1769_s20  ;;  %s2529_s20 = smov %s1854_s27 }
 0x3c4   : > { %s2530_s21 = smov %s1842_s24  ;;  %20 = sbr.rel (!%p18_p2) target bundleno = 5 (0x5), region = 91 }
 0x3cb   :  { %1340 = vsyncpa [#allocation3], 1 }
 0x3cc   :  { %1342 = vsyncpa [#allocation3 + $0x1], 1 }
 0x3cd   :  { %1343 = vsyncpa [#allocation4], 1 }
 0x3ce   :  { %1345 = vsyncpa [#allocation4 + $0x1], 1 }

</bundles_post_ra>
